<compile_context>
chip_gen: v5e
topology: v5e:2x2
jax: 0.10.0
libtpu: 0.0.40
codegen_flags: <defaults>
</compile_context>

<pallas_src>
import functools

import numpy as np
import jax
import jax.numpy as jnp
from jax.experimental import pallas as pl
from jax.experimental.pallas import tpu as pltpu


def _ldam_ce_kernel(m_ref, labels_ref, logits_ref, out_ref, *,
                    scale, batch_size, tile_b):
    """One batch tile: per-sample LDAM cross-entropy, lane-dense output row.

    Layout: class axis on sublanes (C rows), batch samples on lanes (TB cols).
    """
    pid = pl.program_id(0)

    x = logits_ref[...].astype(jnp.float32)          # (C, TB)
    labels = labels_ref[...]                          # (1, TB) int32
    m = m_ref[...].astype(jnp.float32)                # (C, 1) per-class margins
    C, TB = x.shape

    # one_hot(target): class ids live on the sublane axis
    class_ids = jax.lax.broadcasted_iota(jnp.int32, (C, TB), 0)
    one_hot = (class_ids == labels).astype(jnp.float32)          # (C, TB)

    # x_m = x - batch_m at the true-class position only; then scale by s
    z = scale * (x - one_hot * m)                                # (C, TB)

    # numerically stable cross-entropy over the class (sublane) axis
    z_max = jnp.max(z, axis=0, keepdims=True)                    # (1, TB)
    lse = jnp.log(jnp.sum(jnp.exp(z - z_max), axis=0, keepdims=True)) + z_max
    z_true = jnp.sum(z * one_hot, axis=0, keepdims=True)         # (1, TB)
    loss = lse - z_true                                          # per-sample CE

    # zero-out padded batch columns of the last tile
    col = pid * tile_b + jax.lax.broadcasted_iota(jnp.int32, (1, TB), 1)
    loss = jnp.where(col < batch_size, loss, 0.0)

    out_ref[...] = loss.reshape(1, 1, TB)


def ldam_loss(logits, labels, cls_num_list, *, max_m=0.5, s=30.0,
              reduction="mean", block_b=1024):
    """LDAMLoss.forward (weight=None).  logits: (B, C), labels: (B,) int."""
    B, C = logits.shape
    assert len(cls_num_list) == C

    # static per-class margins, exactly as the PyTorch __init__ computes them
    m_np = 1.0 / np.sqrt(np.sqrt(np.asarray(cls_num_list, dtype=np.float64)))
    m_np = m_np * (max_m / np.max(m_np))
    m_list = jnp.asarray(m_np, dtype=jnp.float32).reshape(C, 1)

    # batch on the lane axis: tile width is a multiple of 128, capped by block_b
    tile_b = min(block_b, pl.cdiv(B, 128) * 128)
    padded_b = pl.cdiv(B, tile_b) * tile_b
    num_tiles = padded_b // tile_b

    logits_t = jnp.transpose(logits)                  # (C, B), native dtype
    if padded_b != B:
        logits_t = jnp.pad(logits_t, ((0, 0), (0, padded_b - B)))
        labels = jnp.pad(labels, (0, padded_b - B))
    labels_row = labels.reshape(1, padded_b).astype(jnp.int32)

    kernel = functools.partial(
        _ldam_ce_kernel, scale=float(s), batch_size=B, tile_b=tile_b)

    partials = pl.pallas_call(
        kernel,
        out_shape=jax.ShapeDtypeStruct((num_tiles, 1, tile_b), jnp.float32),
        grid=(num_tiles,),
        in_specs=[
            pl.BlockSpec((C, 1), lambda i: (0, 0)),           # margins (resident)
            pl.BlockSpec((1, tile_b), lambda i: (0, i)),      # labels, lane-dense
            pl.BlockSpec((C, tile_b), lambda i: (0, i)),      # logits^T tile
        ],
        out_specs=pl.BlockSpec((1, 1, tile_b), lambda i: (i, 0, 0)),
        compiler_params=pltpu.CompilerParams(
            dimension_semantics=("parallel",)),
    )(m_list, labels_row, logits_t)

    # TODO(synk): optional per-class `weight` (weighted CE / weighted mean) is
    # not implemented; this covers the module default weight=None.
    total = jnp.sum(partials)
    if reduction == "mean":
        return total / jnp.float32(B)
    elif reduction == "sum":
        return total
    else:
        raise ValueError(f"unsupported reduction: {reduction}")


def _reference(logits, labels, cls_num_list, max_m=0.5, s=30.0):
    """Pure-JAX mirror of the PyTorch LDAMLoss forward (weight=None, mean)."""
    C = logits.shape[1]
    m = 1.0 / np.sqrt(np.sqrt(np.asarray(cls_num_list, dtype=np.float64)))
    m = m * (max_m / np.max(m))
    m = jnp.asarray(m, dtype=jnp.float32)
    x = logits.astype(jnp.float32)
    one_hot = jax.nn.one_hot(labels, C, dtype=jnp.float32)
    x_m = x - m[labels][:, None]
    out = jnp.where(one_hot > 0, x_m, x)
    logp = jax.nn.log_softmax(s * out, axis=1)
    return jnp.mean(-jnp.sum(logp * one_hot, axis=1))


if __name__ == "__main__":
    B, C = 8, 5
    cls_num_list = [500, 200, 100, 50, 20]

    key = jax.random.PRNGKey(0)
    k_logits, k_labels = jax.random.split(key)
    logits = jax.random.normal(k_logits, (B, C), dtype=jnp.float32)
    labels = jax.random.randint(k_labels, (B,), 0, C, dtype=jnp.int32)

    loss_k = ldam_loss(logits, labels, cls_num_list)
    jax.block_until_ready(loss_k)

    loss_r = _reference(logits, labels, cls_num_list)
    assert jnp.allclose(loss_k, loss_r, rtol=1e-5, atol=1e-4), (loss_k, loss_r)

    print("KERNEL_OK")
</pallas_src>

<mosaic_0001>
module attributes {stable_mosaic.version = 11 : i64} {
  func.func @_ldam_ce_kernel(%arg0: i32, %arg1: memref<5x1xf32, #tpu.memory_space<vmem>>, %arg2: memref<1x128xi32, #tpu.memory_space<vmem>>, %arg3: memref<5x128xf32, #tpu.memory_space<vmem>>, %arg4: memref<1x1x128xf32, #tpu.memory_space<vmem>>) attributes {dimension_semantics = [#tpu.dimension_semantics<parallel>], iteration_bounds = array<i64: 1>, scalar_prefetch = 0 : i64, scratch_operands = 0 : i64, tpu.core_type = #tpu.core_type<tc>, window_params = [{pipeline_mode = #tpu.pipeline_mode<synchronous>, transform_indices = @transform_0, window_bounds = array<i64: 5, 1>}, {transform_indices = @transform_1, window_bounds = array<i64: 1, 128>}, {transform_indices = @transform_2, window_bounds = array<i64: 5, 128>}, {transform_indices = @transform_3, window_bounds = array<i64: 1, 1, 128>}]} {
    %c0 = arith.constant 0 : index
    %c0_0 = arith.constant 0 : index
    %0 = vector.load %arg3[%c0, %c0_0] : memref<5x128xf32, #tpu.memory_space<vmem>>, vector<5x128xf32>
    %c0_1 = arith.constant 0 : index
    %c0_2 = arith.constant 0 : index
    %1 = vector.load %arg2[%c0_1, %c0_2] : memref<1x128xi32, #tpu.memory_space<vmem>>, vector<1x128xi32>
    %c0_3 = arith.constant 0 : index
    %c0_4 = arith.constant 0 : index
    %2 = vector.load %arg1[%c0_3, %c0_4] : memref<5x1xf32, #tpu.memory_space<vmem>>, vector<5x1xf32>
    %3 = tpu.iota {dimensions = array<i32: 0>} : vector<5x128xi32>
    %4 = vector.broadcast %1 : vector<1x128xi32> to vector<5x128xi32>
    %5 = arith.cmpi eq, %3, %4 : vector<5x128xi32>
    %6 = arith.extui %5 : vector<5x128xi1> to vector<5x128xi32>
    %7 = arith.sitofp %6 : vector<5x128xi32> to vector<5x128xf32>
    %8 = vector.broadcast %2 : vector<5x1xf32> to vector<5x128xf32>
    %9 = arith.mulf %7, %8 : vector<5x128xf32>
    %10 = arith.subf %0, %9 : vector<5x128xf32>
    %cst = arith.constant 3.000000e+01 : f32
    %11 = vector.broadcast %cst : f32 to vector<5x128xf32>
    %12 = arith.mulf %11, %10 : vector<5x128xf32>
    %cst_5 = arith.constant dense<0xFF800000> : vector<128xf32>
    %13 = vector.multi_reduction <maximumf>, %12, %cst_5 [0] : vector<5x128xf32> to vector<128xf32>
    %14 = vector.shape_cast %13 : vector<128xf32> to vector<1x128xf32>
    %15 = vector.broadcast %14 : vector<1x128xf32> to vector<5x128xf32>
    %16 = arith.subf %12, %15 : vector<5x128xf32>
    %17 = math.exp %16 : vector<5x128xf32>
    %cst_6 = arith.constant dense<0.000000e+00> : vector<128xf32>
    %18 = vector.multi_reduction <add>, %17, %cst_6 [0] : vector<5x128xf32> to vector<128xf32>
    %19 = vector.shape_cast %18 : vector<128xf32> to vector<1x128xf32>
    %20 = math.log %19 : vector<1x128xf32>
    %21 = arith.addf %20, %14 : vector<1x128xf32>
    %22 = arith.mulf %12, %7 : vector<5x128xf32>
    %cst_7 = arith.constant dense<0.000000e+00> : vector<128xf32>
    %23 = vector.multi_reduction <add>, %22, %cst_7 [0] : vector<5x128xf32> to vector<128xf32>
    %24 = vector.shape_cast %23 : vector<128xf32> to vector<1x128xf32>
    %25 = arith.subf %21, %24 : vector<1x128xf32>
    %c128_i32 = arith.constant 128 : i32
    %26 = arith.muli %arg0, %c128_i32 : i32
    %27 = tpu.iota {dimensions = array<i32: 1>} : vector<1x128xi32>
    %28 = vector.broadcast %26 : i32 to vector<1x128xi32>
    %29 = arith.addi %28, %27 : vector<1x128xi32>
    %c8_i32 = arith.constant 8 : i32
    %30 = vector.broadcast %c8_i32 : i32 to vector<1x128xi32>
    %31 = arith.cmpi slt, %29, %30 : vector<1x128xi32>
    %cst_8 = arith.constant 0.000000e+00 : f32
    %32 = vector.broadcast %cst_8 : f32 to vector<1x128xf32>
    %33 = arith.select %31, %25, %32 : vector<1x128xi1>, vector<1x128xf32>
    %34 = vector.shape_cast %33 : vector<1x128xf32> to vector<1x1x128xf32>
    %c0_9 = arith.constant 0 : index
    %c0_10 = arith.constant 0 : index
    %c0_11 = arith.constant 0 : index
    %35 = vector.load %arg4[%c0_9, %c0_10, %c0_11] : memref<1x1x128xf32, #tpu.memory_space<vmem>>, vector<1x1x128xf32>
    tpu.vector_store %arg4[%c0_9, %c0_10, %c0_11], %34 {strides = array<i32>} : memref<1x1x128xf32, #tpu.memory_space<vmem>>, vector<1x1x128xf32>,
    return
  }
  func.func @transform_0(%arg0: i32) -> (i32, i32) {
    %c0_i32 = arith.constant 0 : i32
    %c0_i32_0 = arith.constant 0 : i32
    %c0_i32_1 = arith.constant 0 : i32
    return %c0_i32, %c0_i32_0 : i32, i32
  }
  func.func @transform_1(%arg0: i32) -> (i32, i32) {
    %c0_i32 = arith.constant 0 : i32
    %c0_i32_0 = arith.constant 0 : i32
    return %c0_i32, %arg0 : i32, i32
  }
  func.func @transform_2(%arg0: i32) -> (i32, i32) {
    %c0_i32 = arith.constant 0 : i32
    %c0_i32_0 = arith.constant 0 : i32
    return %c0_i32, %arg0 : i32, i32
  }
  func.func @transform_3(%arg0: i32) -> (i32, i32, i32) {
    %c0_i32 = arith.constant 0 : i32
    %c0_i32_0 = arith.constant 0 : i32
    %c0_i32_1 = arith.constant 0 : i32
    return %arg0, %c0_i32, %c0_i32_0 : i32, i32, i32
  }
}

</mosaic_0001>

<bundles_post_ra>
// kernel: tpu_custom_call.1
= control target key start
LH: loop header
LB: loop body
LE: loop exit
PB: predicated region body
PF: predicated region fallthrough
CT: control target
= control target key end

     0   :  { %v122_v1 = vmov 0   ;;  %s157_s0 = inlined_call_operand.vmem [shape: f32[5,1], index: 0, kind: input, shape index: {}]   ;;  %s158_s1 = inlined_call_operand.vmem [shape: s32[1,128], index: 1, kind: input, shape index: {}]   ;;  %s159_s2 = inlined_call_operand.vmem [shape: f32[5,128], index: 2, kind: input, shape index: {}]   ;;  %s160_s3 = inlined_call_operand.hbm [shape: f32[1,1,128], index: 3, kind: output, shape index: {}]  }
   0x1   :  { %v17_v0 = vld [vmem:[%s157_s0] sm:$0x1f]  ;;  %90 = vset.pattern.permute.xlu0 %v122_v1 }
   0x2   :  { %8 = vsyncpa [#allocation3], 0  ;;  %26 = vperm.xlu0 %90, %v17_v0   ;;  %v18_v2 = vlaneseq  ;;  %v91_v4 = vld [vmem:[%s158_s1] ss:$0 sm:$0xff]  ;;  %v123_v5 = vmov 0.0   ;;  %vm32_vm1 = vcmask 1044480  }
   0x3   :  { %v15_v8 = vld [vmem:[%s159_s2] sm:$0x1f]  ;;  %s124_s0 = smov [#allocation2]   ;;  %s77_s19 = sshll.u32 %s160_s3, 4  ;;  %s78_s19 = int_to_ptr.hbm [resolvable:$true] %s77_s19 }
   0x4   :  { %v19_v3 = vshrl.u32 %v18_v2, 7  ;;  %v64_v37 = vand.u32 127, %v18_v2  ;;  %s75_s1 = sshll.u32 %s124_s0, 4  ;;  %s76_s1 = int_to_ptr.vmem [resolvable:$true] %s75_s1 }
   0x6   :  { %vm21_vm0 = vcmp.eq.s32.totalorder %v19_v3, %v91_v4  ;;  %vm67_vm2 = vcmp.lt.s32.totalorder %v64_v37, 8 }
   0x7   :  { %v86_v6 = vsel %vm21_vm0, 1.0, %v123_v5 }
  0x74   :  { %v27_v7 = vpop.permute.xlu0 %26 }
  0x75   :  { %v29_v9 = vmul.f32 %v86_v6, %v27_v7 }
  0x77   :  { %v30_v10 = vsub.f32 %v15_v8, %v29_v9 }
  0x79   :  { %v31_v11 = vmul.f32 30.0, %v30_v10 }
  0x7b   :  { %v33_v12 = vsel %vm32_vm1, %v31_v11, -inf  ;;  %v53_v21 = vmul.f32 %v86_v6, %v31_v11 }
  0x7c   :  { %v34_v13 = vrot.slane %v33_v12, 4 }
  0x7d   :  { %v54_v23 = vsel %vm32_vm1, %v53_v21, 0.0 }
  0x7e   :  { %v35_v14 = vmax.f32 %v33_v12, %v34_v13  ;;  %v55_v26 = vrot.slane %v54_v23, 4 }
  0x80   :  { %v36_v15 = vrot.slane %v35_v14, 2  ;;  %v56_v29 = vadd.f32 %v55_v26, %v54_v23 }
  0x82   :  { %v37_v16 = vmax.f32 %v35_v14, %v36_v15  ;;  %v57_v32 = vrot.slane %v56_v29, 2 }
  0x84   :  { %v38_v17 = vrot.slane %v37_v16, 1  ;;  %v58_v34 = vadd.f32 %v57_v32, %v56_v29 }
  0x86   :  { %v39_v18 = vmax.f32 %v37_v16, %v38_v17  ;;  %v59_v35 = vrot.slane %v58_v34, 1 }
  0x88   :  { %v40_v19 = vsub.f32 %v31_v11, %v39_v18  ;;  %v60_v40 = vadd.f32 %v59_v35, %v58_v34 }
  0x8a   :  { %v41_v20 = vmul.f32 1.442695, %v40_v19 }
  0x8c   :  { %92 = vpow2.f32 %v41_v20 }
  0x92   :  { %v93_v22 = vpop.eup %92 }
  0x93   :  { %v43_v24 = vsel %vm32_vm1, %v93_v22, 0.0 }
  0x94   :  { %v44_v25 = vrot.slane %v43_v24, 4 }
  0x96   :  { %v45_v27 = vadd.f32 %v44_v25, %v43_v24 }
  0x98   :  { %v46_v28 = vrot.slane %v45_v27, 2 }
  0x9a   :  { %v47_v30 = vadd.f32 %v46_v28, %v45_v27 }
  0x9c   :  { %v48_v31 = vrot.slane %v47_v30, 1 }
  0x9e   :  { %v49_v33 = vadd.f32 %v48_v31, %v47_v30 }
  0xa0   :  { %94 = vlog2.f32 %v49_v33 }
  0xa6   :  { %v95_v36 = vpop.eup %94 }
  0xa7   :  { %v51_v38 = vmul.f32 0.6931472, %v95_v36 }
  0xa9   :  { %v52_v39 = vadd.f32 %v51_v38, %v39_v18 }
  0xab   :  { %v61_v41 = vsub.f32 %v52_v39, %v60_v40 }
  0xad   :  { %v68_v42 = vsel %vm67_vm2, %v61_v41, 0.0 }
  0xae   :  { %69 = vst [vmem:[#allocation2] sm:$0x1] %v68_v42 }
  0xaf   :  { %80 = dma.vmem_to_hbm [thread:$0]  %s76_s1, 16, %s78_s19, [#allocation3]  }
  0xb0   :  { %120 = dma.done.wait [#allocation3], 16  }
  0xb1   :  { %121 = vsyncadd [#allocation3], 4294967280 }
  0xb2   :  { %85 = vsyncpa [#allocation3], 1 }

</bundles_post_ra>
